<compile_context>
chip_gen: v7x
topology: tpu7x:2x2x1
jax: 0.10.0
libtpu: 0.0.40
codegen_flags: <defaults>
</compile_context>

<pallas_src>
import functools

import numpy as np
import jax
import jax.numpy as jnp
from jax.experimental import pallas as pl
from jax.experimental.pallas import tpu as pltpu


def _gdl_ce_sums_kernel(x_ref, y_ref, out_ref, *, num_valid):
    """x_ref: (1, C, TR, 128) logits, y_ref: (1, TR, 128) int32 labels (pad = -1),
    out_ref: (1, 3C+1, 128) f32 per-lane accumulators
             rows [0:C)=S_xy, [C:2C)=S_x, [2C:3C)=S_y, row 3C = CE-sum."""
    v = pl.program_id(1)

    @pl.when(v == 0)
    def _init():
        out_ref[...] = jnp.zeros_like(out_ref)

    x = x_ref[0].astype(jnp.float32)                      # (C, TR, 128)
    y = y_ref[0]                                          # (TR, 128) int32
    C, TR, L = x.shape

    # Validity mask for spatial padding: global flat voxel index < num_valid.
    base = v * (TR * L)
    row = jax.lax.broadcasted_iota(jnp.int32, (TR, L), 0)
    lane = jax.lax.broadcasted_iota(jnp.int32, (TR, L), 1)
    valid = ((base + row * L + lane) < num_valid).astype(jnp.float32)   # (TR, L)

    # One-hot of the label map along a leading channel axis (VPU-only work;
    # padded voxels carry label -1 and therefore match no channel).
    yoh = jnp.stack([(y == c).astype(jnp.float32) for c in range(C)], axis=0)  # (C,TR,L)

    # Channel softmax + logsumexp sharing the exp work.
    m = jnp.max(x, axis=0)                                # (TR, L)
    e = jnp.exp(x - m[None])                              # (C, TR, L)   EUP
    s = jnp.sum(e, axis=0)                                # (TR, L)
    lse = m + jnp.log(s)                                  # (TR, L)
    p = e * (valid / s)[None]                             # masked softmax probs

    z_sel = jnp.sum(x * yoh, axis=0)                      # z[label] per voxel
    ce = (lse - z_sel) * valid                            # per-voxel cross-entropy

    # Per-lane partial sums; the single cross-lane reduce is deferred to JAX glue.
    sxy = jnp.sum(p * yoh, axis=1)                        # (C, L)
    sx = jnp.sum(p, axis=1)                               # (C, L)
    sy = jnp.sum(yoh, axis=1)                             # (C, L)
    ce_row = jnp.sum(ce, axis=0)                          # (L,)

    contrib = jnp.concatenate([sxy, sx, sy, ce_row[None, :]], axis=0)   # (3C+1, L)
    out_ref[...] += contrib[None]


def _round_up(n, m):
    return ((n + m - 1) // m) * m


def gdl_and_ce_loss(net_output, target, *, batch_dice=False, do_bg=True,
                    smooth=1.0, square_volumes=False, max_tile_rows=1024):
    """JAX/Pallas equivalent of GDL_and_CE_loss (aggregate='sum', default CE kwargs,
    GDL(softmax_helper, batch_dice, do_bg, smooth, square=False, square_volumes))."""
    # TODO(synk): GDL(square=True) per-voxel squaring and CrossentropyND kwargs
    # (class weight / ignore_index) are not implemented.
    x = jnp.asarray(net_output)
    B, C = int(x.shape[0]), int(x.shape[1])
    spatial = tuple(int(d) for d in x.shape[2:])
    V = int(np.prod(spatial))

    y = jnp.asarray(target)
    if y.ndim == x.ndim:
        if y.shape[1] != 1:
            # TODO(synk): one-hot targets unsupported — CrossentropyND needs a label map.
            raise NotImplementedError("target must be a label map (b,1,...) or (b,...)")
        y = y.reshape((B,) + spatial)
    y = y.astype(jnp.int32)

    rows = -(-V // 128)
    # Cap the logits tile at ~2 MiB so the double-buffered working set fits the
    # default scoped VMEM on every generation (incl. v7x's smaller 64 MiB VMEM).
    cap = max(8, ((2 * 1024 * 1024) // (C * 128 * 4)) // 8 * 8)
    tr = max(8, (min(max_tile_rows, cap, _round_up(rows, 8)) // 8) * 8)
    rows_pad = _round_up(rows, tr)
    vp = rows_pad * 128

    x_flat = x.reshape(B, C, V)                 # keep input dtype (bf16 ok)
    y_flat = y.reshape(B, V)
    if vp > V:
        x_flat = jnp.pad(x_flat, ((0, 0), (0, 0), (0, vp - V)))
        y_flat = jnp.pad(y_flat, ((0, 0), (0, vp - V)), constant_values=-1)
    x4 = x_flat.reshape(B, C, rows_pad, 128)
    y3 = y_flat.reshape(B, rows_pad, 128)

    nstat = 3 * C + 1
    acc = pl.pallas_call(
        functools.partial(_gdl_ce_sums_kernel, num_valid=V),
        out_shape=jax.ShapeDtypeStruct((B, nstat, 128), jnp.float32),
        grid=(B, rows_pad // tr),
        in_specs=[
            pl.BlockSpec((1, C, tr, 128), lambda b, v: (b, 0, v, 0)),
            pl.BlockSpec((1, tr, 128), lambda b, v: (b, v, 0)),
        ],
        out_specs=pl.BlockSpec((1, nstat, 128), lambda b, v: (b, 0, 0)),
        compiler_params=pltpu.CompilerParams(
            dimension_semantics=("parallel", "arbitrary")),
    )(x4, y3)

    red = jnp.sum(acc, axis=-1)                 # (B, 3C+1) final cross-lane reduce
    s_xy = red[:, 0:C]
    s_x = red[:, C:2 * C]
    s_y = red[:, 2 * C:3 * C]
    ce_sum = red[:, 3 * C]

    # ---- GDL glue (softmax already applied inside the kernel) ----
    tp = s_xy
    fp = s_x - s_xy
    fn = s_y - s_xy
    vol_src = s_y
    if not do_bg:
        tp, fp, fn, vol_src = tp[:, 1:], fp[:, 1:], fn[:, 1:], vol_src[:, 1:]
    if batch_dice:
        tp, fp, fn = tp.sum(0), fp.sum(0), fn.sum(0)
        volumes = vol_src.sum(0) + 1e-6
    else:
        volumes = vol_src + 1e-6
    if square_volumes:
        volumes = volumes ** 2
    tp, fp, fn = tp / volumes, fp / volumes, fn / volumes
    axis = 0 if batch_dice else 1
    tp, fp, fn = tp.sum(axis), fp.sum(axis), fn.sum(axis)
    dc = (2.0 * tp + smooth) / (2.0 * tp + fp + fn + smooth)
    dc_loss = -jnp.mean(dc)

    # ---- CrossentropyND glue (mean over all voxels) ----
    ce_loss = jnp.sum(ce_sum) / float(B * V)

    return ce_loss + dc_loss                    # aggregate == 'sum'


def _gdl_and_ce_ref(x, y, batch_dice=False, do_bg=True, smooth=1.0, square_volumes=False):
    """Plain-JAX reference mirroring the PyTorch module, used only for a sanity check."""
    x = jnp.asarray(x, jnp.float32)
    B, C = x.shape[:2]
    spatial = x.shape[2:]
    y_lab = jnp.asarray(y)
    if y_lab.ndim == x.ndim:
        y_lab = y_lab.reshape((B,) + tuple(spatial))
    y_lab = y_lab.astype(jnp.int32)
    yoh = jax.nn.one_hot(y_lab, C, axis=1, dtype=jnp.float32)
    p = jax.nn.softmax(x, axis=1)
    if not do_bg:
        p, yoh = p[:, 1:], yoh[:, 1:]
    axes = tuple([0] + list(range(2, x.ndim))) if batch_dice else tuple(range(2, x.ndim))
    tp = (p * yoh).sum(axes)
    fp = (p * (1.0 - yoh)).sum(axes)
    fn = ((1.0 - p) * yoh).sum(axes)
    volumes = yoh.sum(axes) + 1e-6
    if square_volumes:
        volumes = volumes ** 2
    tp, fp, fn = tp / volumes, fp / volumes, fn / volumes
    axis = 0 if batch_dice else 1
    tp, fp, fn = tp.sum(axis), fp.sum(axis), fn.sum(axis)
    dc = (2.0 * tp + smooth) / (2.0 * tp + fp + fn + smooth)
    dc_loss = -jnp.mean(dc)
    logp = jax.nn.log_softmax(x, axis=1)
    nll = -jnp.take_along_axis(logp, y_lab[:, None], axis=1)
    ce_loss = jnp.mean(nll)
    return ce_loss + dc_loss


if __name__ == "__main__":
    key = jax.random.PRNGKey(0)
    k1, k2, k3, k4 = jax.random.split(key, 4)

    # Check 1: default GDL kwargs, label map with explicit channel dim (b, 1, x, y).
    B, C, H, W = 2, 4, 16, 16
    x = jax.random.normal(k1, (B, C, H, W), dtype=jnp.float32)
    y = jax.random.randint(k2, (B, 1, H, W), 0, C, dtype=jnp.int32)
    out = jax.block_until_ready(gdl_and_ce_loss(x, y))
    ref = jax.block_until_ready(_gdl_and_ce_ref(x, y))
    assert np.allclose(np.asarray(out), np.asarray(ref), rtol=1e-4, atol=1e-5), (out, ref)

    # Check 2: non-128-multiple spatial size (exercises the in-kernel padding mask),
    # label map without channel dim, batch_dice=True, do_bg=False.
    B2, C2, H2, W2 = 2, 3, 15, 15
    x2 = jax.random.normal(k3, (B2, C2, H2, W2), dtype=jnp.float32)
    y2 = jax.random.randint(k4, (B2, H2, W2), 0, C2, dtype=jnp.int32)
    out2 = jax.block_until_ready(gdl_and_ce_loss(x2, y2, batch_dice=True, do_bg=False))
    ref2 = jax.block_until_ready(_gdl_and_ce_ref(x2, y2, batch_dice=True, do_bg=False))
    assert np.allclose(np.asarray(out2), np.asarray(ref2), rtol=1e-4, atol=1e-5), (out2, ref2)

    print("KERNEL_OK")
</pallas_src>

<mosaic_0001>
module attributes {stable_mosaic.version = 11 : i64} {
  func.func @_gdl_ce_sums_kernel(%arg0: i32, %arg1: i32, %arg2: memref<1x4x8x128xf32, #tpu.memory_space<vmem>>, %arg3: memref<1x8x128xi32, #tpu.memory_space<vmem>>, %arg4: memref<1x13x128xf32, #tpu.memory_space<vmem>>) attributes {dimension_semantics = [#tpu.dimension_semantics<parallel>, #tpu.dimension_semantics<arbitrary>], iteration_bounds = array<i64: 2, 1>, scalar_prefetch = 0 : i64, scratch_operands = 0 : i64, tpu.core_type = #tpu.core_type<tc>, window_params = [{transform_indices = @transform_0, window_bounds = array<i64: 1, 4, 8, 128>}, {transform_indices = @transform_1, window_bounds = array<i64: 1, 8, 128>}, {transform_indices = @transform_2, window_bounds = array<i64: 1, 13, 128>}]} {
    %c0_i32 = arith.constant 0 : i32
    %0 = arith.cmpi eq, %arg1, %c0_i32 : i32
    %1 = arith.extui %0 : i1 to i32
    %c0_i32_0 = arith.constant 0 : i32
    %2 = arith.cmpi ne, %1, %c0_i32_0 : i32
    scf.if %2 {
      %cst_20 = arith.constant 0.000000e+00 : f32
      %67 = vector.broadcast %cst_20 : f32 to vector<1x13x128xf32>
      %c0_21 = arith.constant 0 : index
      %c0_22 = arith.constant 0 : index
      %c0_23 = arith.constant 0 : index
      %68 = vector.load %arg4[%c0_21, %c0_22, %c0_23] : memref<1x13x128xf32, #tpu.memory_space<vmem>>, vector<1x13x128xf32>
      tpu.vector_store %arg4[%c0_21, %c0_22, %c0_23], %67 {strides = array<i32>} : memref<1x13x128xf32, #tpu.memory_space<vmem>>, vector<1x13x128xf32>,
    } else {
    }
    %c0 = arith.constant 0 : index
    %c0_1 = arith.constant 0 : index
    %c0_2 = arith.constant 0 : index
    %c0_3 = arith.constant 0 : index
    %3 = vector.load %arg2[%c0, %c0_1, %c0_2, %c0_3] : memref<1x4x8x128xf32, #tpu.memory_space<vmem>>, vector<1x4x8x128xf32>
    %4 = vector.shape_cast %3 : vector<1x4x8x128xf32> to vector<4x8x128xf32>
    %c0_4 = arith.constant 0 : index
    %c0_5 = arith.constant 0 : index
    %c0_6 = arith.constant 0 : index
    %5 = vector.load %arg3[%c0_4, %c0_5, %c0_6] : memref<1x8x128xi32, #tpu.memory_space<vmem>>, vector<1x8x128xi32>
    %6 = vector.shape_cast %5 : vector<1x8x128xi32> to vector<8x128xi32>
    %c1024_i32 = arith.constant 1024 : i32
    %7 = arith.muli %arg1, %c1024_i32 : i32
    %8 = tpu.iota {dimensions = array<i32: 0>} : vector<8x128xi32>
    %9 = tpu.iota {dimensions = array<i32: 1>} : vector<8x128xi32>
    %c128_i32 = arith.constant 128 : i32
    %10 = vector.broadcast %c128_i32 : i32 to vector<8x128xi32>
    %11 = arith.muli %8, %10 : vector<8x128xi32>
    %12 = vector.broadcast %7 : i32 to vector<8x128xi32>
    %13 = arith.addi %12, %11 : vector<8x128xi32>
    %14 = arith.addi %13, %9 : vector<8x128xi32>
    %c256_i32 = arith.constant 256 : i32
    %15 = vector.broadcast %c256_i32 : i32 to vector<8x128xi32>
    %16 = arith.cmpi slt, %14, %15 : vector<8x128xi32>
    %17 = arith.extui %16 : vector<8x128xi1> to vector<8x128xi32>
    %18 = arith.sitofp %17 : vector<8x128xi32> to vector<8x128xf32>
    %c0_i32_7 = arith.constant 0 : i32
    %19 = vector.broadcast %c0_i32_7 : i32 to vector<8x128xi32>
    %20 = arith.cmpi eq, %6, %19 : vector<8x128xi32>
    %21 = arith.extui %20 : vector<8x128xi1> to vector<8x128xi32>
    %22 = arith.sitofp %21 : vector<8x128xi32> to vector<8x128xf32>
    %c1_i32 = arith.constant 1 : i32
    %23 = vector.broadcast %c1_i32 : i32 to vector<8x128xi32>
    %24 = arith.cmpi eq, %6, %23 : vector<8x128xi32>
    %25 = arith.extui %24 : vector<8x128xi1> to vector<8x128xi32>
    %26 = arith.sitofp %25 : vector<8x128xi32> to vector<8x128xf32>
    %c2_i32 = arith.constant 2 : i32
    %27 = vector.broadcast %c2_i32 : i32 to vector<8x128xi32>
    %28 = arith.cmpi eq, %6, %27 : vector<8x128xi32>
    %29 = arith.extui %28 : vector<8x128xi1> to vector<8x128xi32>
    %30 = arith.sitofp %29 : vector<8x128xi32> to vector<8x128xf32>
    %c3_i32 = arith.constant 3 : i32
    %31 = vector.broadcast %c3_i32 : i32 to vector<8x128xi32>
    %32 = arith.cmpi eq, %6, %31 : vector<8x128xi32>
    %33 = arith.extui %32 : vector<8x128xi1> to vector<8x128xi32>
    %34 = arith.sitofp %33 : vector<8x128xi32> to vector<8x128xf32>
    %35 = vector.shape_cast %22 : vector<8x128xf32> to vector<1x8x128xf32>
    %36 = vector.shape_cast %26 : vector<8x128xf32> to vector<1x8x128xf32>
    %37 = vector.shape_cast %30 : vector<8x128xf32> to vector<1x8x128xf32>
    %38 = vector.shape_cast %34 : vector<8x128xf32> to vector<1x8x128xf32>
    %39 = tpu.concatenate %35, %36, %37, %38 in 0 : vector<1x8x128xf32>, vector<1x8x128xf32>, vector<1x8x128xf32>, vector<1x8x128xf32> -> vector<4x8x128xf32>
    %cst = arith.constant dense<0xFF800000> : vector<8x128xf32>
    %40 = vector.multi_reduction <maximumf>, %4, %cst [0] : vector<4x8x128xf32> to vector<8x128xf32>
    %41 = vector.shape_cast %40 : vector<8x128xf32> to vector<1x8x128xf32>
    %42 = vector.broadcast %41 : vector<1x8x128xf32> to vector<4x8x128xf32>
    %43 = arith.subf %4, %42 : vector<4x8x128xf32>
    %44 = math.exp %43 : vector<4x8x128xf32>
    %cst_8 = arith.constant dense<0.000000e+00> : vector<8x128xf32>
    %45 = vector.multi_reduction <add>, %44, %cst_8 [0] : vector<4x8x128xf32> to vector<8x128xf32>
    %46 = math.log %45 : vector<8x128xf32>
    %47 = arith.addf %40, %46 : vector<8x128xf32>
    %48 = arith.divf %18, %45 : vector<8x128xf32>
    %49 = vector.shape_cast %48 : vector<8x128xf32> to vector<1x8x128xf32>
    %50 = vector.broadcast %49 : vector<1x8x128xf32> to vector<4x8x128xf32>
    %51 = arith.mulf %44, %50 : vector<4x8x128xf32>
    %52 = arith.mulf %4, %39 : vector<4x8x128xf32>
    %cst_9 = arith.constant dense<0.000000e+00> : vector<8x128xf32>
    %53 = vector.multi_reduction <add>, %52, %cst_9 [0] : vector<4x8x128xf32> to vector<8x128xf32>
    %54 = arith.subf %47, %53 : vector<8x128xf32>
    %55 = arith.mulf %54, %18 : vector<8x128xf32>
    %56 = arith.mulf %51, %39 : vector<4x8x128xf32>
    %cst_10 = arith.constant dense<0.000000e+00> : vector<4x128xf32>
    %57 = vector.multi_reduction <add>, %56, %cst_10 [1] : vector<4x8x128xf32> to vector<4x128xf32>
    %cst_11 = arith.constant dense<0.000000e+00> : vector<4x128xf32>
    %58 = vector.multi_reduction <add>, %51, %cst_11 [1] : vector<4x8x128xf32> to vector<4x128xf32>
    %cst_12 = arith.constant dense<0.000000e+00> : vector<4x128xf32>
    %59 = vector.multi_reduction <add>, %39, %cst_12 [1] : vector<4x8x128xf32> to vector<4x128xf32>
    %cst_13 = arith.constant dense<0.000000e+00> : vector<128xf32>
    %60 = vector.multi_reduction <add>, %55, %cst_13 [0] : vector<8x128xf32> to vector<128xf32>
    %61 = vector.shape_cast %60 : vector<128xf32> to vector<1x128xf32>
    %62 = tpu.concatenate %57, %58, %59, %61 in 0 : vector<4x128xf32>, vector<4x128xf32>, vector<4x128xf32>, vector<1x128xf32> -> vector<13x128xf32>
    %c0_14 = arith.constant 0 : index
    %c0_15 = arith.constant 0 : index
    %c0_16 = arith.constant 0 : index
    %63 = vector.load %arg4[%c0_14, %c0_15, %c0_16] : memref<1x13x128xf32, #tpu.memory_space<vmem>>, vector<1x13x128xf32>
    %64 = vector.shape_cast %62 : vector<13x128xf32> to vector<1x13x128xf32>
    %65 = arith.addf %63, %64 : vector<1x13x128xf32>
    %c0_17 = arith.constant 0 : index
    %c0_18 = arith.constant 0 : index
    %c0_19 = arith.constant 0 : index
    %66 = vector.load %arg4[%c0_17, %c0_18, %c0_19] : memref<1x13x128xf32, #tpu.memory_space<vmem>>, vector<1x13x128xf32>
    tpu.vector_store %arg4[%c0_17, %c0_18, %c0_19], %65 {strides = array<i32>} : memref<1x13x128xf32, #tpu.memory_space<vmem>>, vector<1x13x128xf32>,
    return
  }
  func.func @transform_0(%arg0: i32, %arg1: i32) -> (i32, i32, i32, i32) {
    %c0_i32 = arith.constant 0 : i32
    %c0_i32_0 = arith.constant 0 : i32
    %c0_i32_1 = arith.constant 0 : i32
    return %arg0, %c0_i32, %arg1, %c0_i32_0 : i32, i32, i32, i32
  }
  func.func @transform_1(%arg0: i32, %arg1: i32) -> (i32, i32, i32) {
    %c0_i32 = arith.constant 0 : i32
    %c0_i32_0 = arith.constant 0 : i32
    return %arg0, %arg1, %c0_i32 : i32, i32, i32
  }
  func.func @transform_2(%arg0: i32, %arg1: i32) -> (i32, i32, i32) {
    %c0_i32 = arith.constant 0 : i32
    %c0_i32_0 = arith.constant 0 : i32
    %c0_i32_1 = arith.constant 0 : i32
    return %arg0, %c0_i32, %c0_i32_0 : i32, i32, i32
  }
}

</mosaic_0001>

<bundles_post_ra>
// kernel: tpu_custom_call.1
= control target key start
LH: loop header
LB: loop body
LE: loop exit
PB: predicated region body
PF: predicated region fallthrough
CT: control target
= control target key end

     0   :  { %7 = vsyncpa [#allocation3], 0  ;;  %s966_s0 = inlined_call_operand.hbm [shape: f32[2,4,8,128], index: 0, kind: input, shape index: {}]   ;;  %s967_s1 = inlined_call_operand.hbm [shape: s32[2,8,128], index: 1, kind: input, shape index: {}]   ;;  %s968_s2 = inlined_call_operand.vmem [shape: f32[2,13,128], index: 2, kind: output, shape index: {}]  }
   0x1   :  { %9 = vsyncpa [#allocation3 + $0x1], 0 }
   0x2   :  { %10 = vsyncpa [#allocation5], 0 }
   0x3   :  { %12 = vsyncpa [#allocation5 + $0x1], 0  ;;  %s746_s9 = smov 0   ;;  %s748_s10 = smov 0  }
   0x4   :  { %s750_s11 = smov 0   ;;  %s752_s12 = smov 0  }
   0x5   :  { %s754_s13 = smov 0   ;;  %s756_s14 = smov 0  }
   0x6 LB: > { %s512_s15 = sadd.s32 4294967295, %s724_s14   ;;  %s30_s16 = sadd.s32 1, %s720_s13  ;;  %s724_s14 = sphi %s756_s14, %s18_s14   ;;  %s720_s13 = sphi %s754_s13, %s980_s13   ;;  %s716_s12 = sphi %s752_s12, %s979_s12   ;;  %s712_s11 = sphi %s750_s11, %s978_s11   ;;  %s708_s10 = sphi %s748_s10, %s977_s10   ;;  %s704_s9 = sphi %s746_s9, %s976_s9  }
   0x7   : > { %p32_p0 = scmp.ge.s32.totalorder %s30_s16, 2  ;;  %s39_s17 = sadd.s32 1, %s712_s11 }
   0x8   : > { %p46_p1 = scmp.ne.s32.totalorder %s712_s11, %s708_s10  ;;  %p47_p2 = scmp.eq.s32.totalorder %s724_s14, 0 }
   0x9   : > { %s982_s16 = smov (%p32_p0, %s30_s16), 0  ;;  %p52_p4 = scmp.ne.s32.totalorder %s708_s10, %s704_s9 }
   0xa   : > { %p782_p3 = por %p47_p2, %p46_p1  ;;  %s34_s19 = ssub.s32 %s720_s13, %s982_s16 }
   0xb   : > { %p53_p5 = scmp.eq.s32.totalorder %s512_s15, 0  ;;  %p37_p6 = scmp.eq.s32.totalorder %s34_s19, 0 }
   0xc   : > { %p546_p8 = scmp.lt.s32.totalorder %s724_s14, 2  ;;  %s798_s22 = sand.u32 1, %s712_s11  }
   0xd   : > { %p789_p7 = por %p53_p5, %p52_p4  ;;  %s533_s23 = sshll.u32 %s720_s13, 9 }
   0xe   : > { %s795_s21 = scalar_select %p37_p6, %s712_s11, %s39_s17  }
   0xf   : > { %s971_s20 = scalar_select %p789_p7, 1, 0 }
  0x10   : > { %s516_s24 = sshll.u32 %s798_s22, 5  ;;  %s805_s27 = scalar_lea.hbm %s966_s0, %s533_s23 }
  0x11   : > { %s134_s28 = scalar_lea.vmem [#allocation2], %s516_s24  ;;  %p809_p9 = pnand %p546_p8, %p782_p3 }
  0x12   : > { %s142_s29 = sshll.u32 %s134_s28, 4  ;;  %s131_s3 = scalar_lea.sflag [#allocation3], %s798_s22  ;;  %s813_s29 = int_to_ptr.vmem [resolvable:$true] %s142_s29 }
  0x13   : > { %s610_s4 = scalar_lea.hbm %s805_s27, 512  ;;  %p612_p11 = pneg %p809_p9 }
  0x14   : > { %p611_p10 = scmp.ne.s32.totalorder %s805_s27, %s610_s4  ;;  %s615_s7 = scalar_lea.hbm %s966_s0, 1024 }
  0x15   : > { %p616_p0 = scmp.lt.u32.totalorder %s805_s27, %s966_s0  ;;  %p617_p1 = scmp.lt.u32.totalorder %s615_s7, %s610_s4 }
  0x16   : > { %p613_p12 = pnand %p612_p11, %p611_p10  ;;  %p619_p3 = scmp.lt.u32.totalorder %s610_s4, %s805_s27 }
  0x17   : > { %p618_p2 = por %p617_p1, %p616_p0 }
  0x18   : > { %p614_p13 = pneg %p613_p12 }
  0x19   : > { %p620_p4 = por %p619_p3, %p618_p2 }
  0x1b   : > { %p621_p5 = pnand %p620_p4, %p614_p13 }
  0x1d   : > { %624 = shalt.err (!%p621_p5)
}
  0x1e   : > { %s625_s15 = scalar_lea.vmem %s813_s29, 512  ;;  %s726_s17 = smov [#allocation2]  }
  0x1f   : > { %p626_p6 = scmp.ne.s32.totalorder %s813_s29, %s625_s15  ;;  %s630_s18 = sshll.u32 %s726_s17, 4  ;;  %s631_s18 = int_to_ptr.vmem [resolvable:$false] %s630_s18 }
  0x20   : > { %s632_s19 = scalar_lea.vmem %s631_s18, 1024  ;;  %p633_p12 = scmp.lt.s32.totalorder %s813_s29, %s631_s18 }
  0x21   : > { %p628_p8 = pnand %p626_p6, %p612_p11  ;;  %p634_p0 = scmp.lt.s32.totalorder %s632_s19, %s625_s15 }
  0x23   : > { %p629_p10 = pneg %p628_p8  ;;  %p635_p1 = por %p634_p0, %p633_p12 }
  0x25   : > { %p636_p2 = pnand %p635_p1, %p629_p10 }
  0x27   : > { %639 = shalt.err (!%p636_p2)
}
  0x28   : > { %s727_s23 = smov 128   ;;  %s728_s24 = smov 8  }
  0x29   : > { %542 = dma.hbm_to_vmem [thread:$0]  (!%p809_p9), %s805_s27, 512, %s813_s29, %s131_s3, %s727_s23, %s727_s23, %s728_s24  }
  0x2a   : > { %p521_p13 = scmp.ge.s32.totalorder %s724_s14, 1  ;;  %p169_p3 = scmp.lt.s32.totalorder %s724_s14, 3 }
  0x2b   : > { %s519_s25 = sshll.u32 %s798_s22, 3  ;;  %s520_s28 = sshll.u32 %s720_s13, 7 }
  0x2c   : > { %p846_p4 = pnand %p521_p13, %p169_p3  ;;  %s156_s4 = scalar_lea.vmem [#allocation4], %s519_s25 }
  0x2d   : > { %s164_s5 = sshll.u32 %s156_s4, 4  ;;  %s854_s8 = scalar_lea.hbm %s967_s1, %s520_s28  ;;  %s165_s5 = int_to_ptr.vmem [resolvable:$true] %s164_s5 }
  0x2e   : > { %s973_s26 = scalar_select %p846_p4, 1, 0 }
  0x2f   : > { %s153_s27 = scalar_lea.sflag [#allocation5], %s798_s22  ;;  %s640_s29 = scalar_lea.hbm %s854_s8, 128 }
  0x30   : > { %p641_p5 = scmp.ne.s32.totalorder %s854_s8, %s640_s29  ;;  %s645_s15 = scalar_lea.hbm %s967_s1, 256 }
  0x31   : > { %p646_p10 = scmp.lt.u32.totalorder %s854_s8, %s967_s1  ;;  %p647_p12 = scmp.lt.u32.totalorder %s645_s15, %s640_s29 }
  0x32   : > { %p643_p6 = pnand %p641_p5, %p612_p11  ;;  %p649_p1 = scmp.lt.u32.totalorder %s640_s29, %s854_s8 }
  0x33   : > { %p648_p0 = por %p647_p12, %p646_p10 }
  0x34   : > { %p644_p8 = pneg %p643_p6 }
  0x35   : > { %p650_p2 = por %p649_p1, %p648_p0 }
  0x37   : > { %p651_p13 = pnand %p650_p2, %p644_p8 }
  0x39   : > { %654 = shalt.err (!%p651_p13)
}
  0x3a   : > { %s655_s22 = scalar_lea.vmem %s165_s5, 128  ;;  %s729_s19 = smov [#allocation4]  }
  0x3b   : > { %p656_p3 = scmp.ne.s32.totalorder %s165_s5, %s655_s22  ;;  %s660_s23 = sshll.u32 %s729_s19, 4  ;;  %s661_s23 = int_to_ptr.vmem [resolvable:$false] %s660_s23 }
  0x3c   : > { %s662_s24 = scalar_lea.vmem %s661_s23, 256  ;;  %p663_p7 = scmp.lt.s32.totalorder %s165_s5, %s661_s23 }
  0x3d   : > { %p658_p5 = pnand %p656_p3, %p612_p11  ;;  %p664_p4 = scmp.lt.s32.totalorder %s662_s24, %s655_s22 }
  0x3f   : > { %p659_p6 = pneg %p658_p5  ;;  %p665_p10 = por %p664_p4, %p663_p7 }
  0x41   : > { %p666_p12 = pnand %p665_p10, %p659_p6 }
  0x43   : > { %669 = shalt.err (!%p666_p12)
}
  0x44   : > { %545 = dma.hbm_to_vmem [thread:$0]  (!%p809_p9), %s854_s8, 128, %s165_s5, %s153_s27  }
  0x45   : > { %p974_p8 = scmp.ne.s32.totalorder %s973_s26, 0 }
  0x46   : > { %s175_s25 = sand.u32 (!%p974_p8), 1, %s708_s10   ;;  %p975_p11 = scmp.ne.s32.totalorder (!%p974_p8), %s971_s20, 0 }
  0x47   : > { %173 = sbr.rel (%p974_p8) target bundleno = 158 (0x9e), region = 28  ;;  %s522_s28 = sshll.u32 (!%p974_p8), %s175_s25, 5 }
  0x48   : > { %s176_s4 = scalar_lea.sflag (!%p974_p8), [#allocation3], %s175_s25  ;;  %s179_s6 = scalar_lea.vmem (!%p974_p8), [#allocation2], %s522_s28 }
  0x4e   : > { %695 = dma.done.wait (%p975_p11), %s176_s4, 512  }
  0x4f   : > { %697 = vsyncadd (%p975_p11), %s176_s4, 4294966784  ;;  %s523_s7 = sshll.u32 %s175_s25, 3  ;;  %s185_s29 = scalar_lea.sflag [#allocation5], %s175_s25 }
  0x50   : > { %s188_s30 = scalar_lea.vmem [#allocation4], %s523_s7 }
  0x51   : > { %699 = dma.done.wait (%p975_p11), %s185_s29, 128  }
  0x52   : > { %701 = vsyncadd (%p975_p11), %s185_s29, 4294967168  ;;  %p214_p7 = scmp.lt.s32.totalorder %s716_s12, 1  ;;  %v730_v0 = vmov 0.0   ;;  %v225_v1 = vld [vmem:[%s179_s6] sm:$0xff]  ;;  %v226_v2 = vld [vmem:[%s179_s6 + $0x8] sm:$0xff]  ;;  %v231_v16 = vlaneseq  ;;  %vm387_vm5 = vcmask 1045509  }
  0x53   : > { %v227_v3 = vld [vmem:[%s179_s6 + $0x10] sm:$0xff]  ;;  %v228_v4 = vld [vmem:[%s179_s6 + $0x18] sm:$0xff]  ;;  %v254_v5 = vmax.f32 %v225_v1, %v226_v2  ;;  %v229_v17 = vld [vmem:[%s188_s30] sm:$0xff]  ;;  %vm376_vm6 = vcmask 1041409   ;;  %vm389_vm7 = vcmask 1046534   ;;  %vm378_vm8 = vcmask 1042434  }
  0x54   : > { %s984_s12 = smov (!%p214_p7, %s716_s12), 1  ;;  %v255_v6 = vmax.f32 %v227_v3, %v228_v4  ;;  %v232_v20 = vshrl.u32 %v231_v16, 7  ;;  %vm242_vm0 = vcmp.eq.s32.totalorder %v229_v17, 0  ;;  %vm245_vm1 = vcmp.eq.s32.totalorder %v229_v17, 1 }
  0x55   : > { %s534_s26 = sshll.u32 %s984_s12, 4  ;;  %v234_v25 = vand.u32 127, %v231_v16  ;;  %v527_v27 = vsel %vm242_vm0, 1.0, %v730_v0  ;;  %v528_v28 = vsel %vm245_vm1, 1.0, %v730_v0  ;;  %vm248_vm2 = vcmp.eq.s32.totalorder %v229_v17, 2 }
  0x56   : > { %s892_s27 = scalar_lea.vmem %s968_s2, %s534_s26  ;;  %v895_v7 = vmax.f32 %v254_v5, %v255_v6  ;;  %v235_v26 = vmul.u32 128, %v232_v20  ;;  %v342_v30 = vrot.slane %v527_v27, 4  ;;  %v348_v31 = vrot.slane %v528_v28, 4 }
  0x57   : > { %224 = vst [vmem:[%s892_s27 + $0x8] sm:$0x1f] %v730_v0  ;;  %vm251_vm3 = vcmp.eq.s32.totalorder %v229_v17, 3  ;;  %v281_v32 = vmul.f32 %v527_v27, %v225_v1  ;;  %v282_v33 = vmul.f32 %v528_v28, %v226_v2  ;;  %v529_v35 = vsel %vm248_vm2, 1.0, %v730_v0 }
  0x58   : > { %v257_v8 = vsub.f32 %v225_v1, %v895_v7  ;;  %v258_v9 = vsub.f32 %v226_v2, %v895_v7  ;;  %v259_v10 = vsub.f32 %v227_v3, %v895_v7  ;;  %v260_v11 = vsub.f32 %v228_v4, %v895_v7 }
  0x59   : > { %v238_v34 = vadd.s32 %v235_v26, %v234_v25  ;;  %v343_v36 = vadd.f32 %v527_v27, %v342_v30  ;;  %v349_v37 = vadd.f32 %v528_v28, %v348_v31  ;;  %v354_v38 = vrot.slane %v529_v35, 4 }
  0x5a   : > { %v261_v12 = vmul.f32 1.442695, %v257_v8  ;;  %v263_v13 = vmul.f32 1.442695, %v258_v9  ;;  %v265_v14 = vmul.f32 1.442695, %v259_v10  ;;  %v283_v40 = vmul.f32 %v529_v35, %v227_v3 }
  0x5b   : > { %v267_v15 = vmul.f32 1.442695, %v260_v11  ;;  %v530_v39 = vsel %vm251_vm3, 1.0, %v730_v0  ;;  %v285_v41 = vadd.f32 %v282_v33, %v281_v32  ;;  %vm239_vm4 = vcmp.lt.s32.totalorder %v238_v34, 256 }
  0x5c   : > { %598 = vpow2.f32 %v261_v12  ;;  %v360_v42 = vrot.slane %v530_v39, 4  ;;  %v344_v43 = vrot.slane %v343_v36, 2  ;;  %v350_v44 = vrot.slane %v349_v37, 2 }
  0x5d   : > { %600 = vpow2.f32 %v263_v13  ;;  %v355_v45 = vadd.f32 %v529_v35, %v354_v38  ;;  %v901_v46 = vsel %vm239_vm4, 1.0, %v730_v0  ;;  %v284_v47 = vmul.f32 %v530_v39, %v228_v4 }
  0x5e   : > { %602 = vpow2.f32 %v265_v14  ;;  %v286_v48 = vadd.f32 %v285_v41, %v283_v40  ;;  %v903_v49 = vadd.f32 %v530_v39, %v360_v42  ;;  %v905_v51 = vadd.f32 %v344_v43, %v343_v36 }
  0x5f   : > { %604 = vpow2.f32 %v267_v15  ;;  %v907_v52 = vadd.f32 %v350_v44, %v349_v37  ;;  %v356_v53 = vrot.slane %v355_v45, 2  ;;  %vm391_vm9 = vcmask 1047559  }
  0x60   : > { %v910_v57 = vadd.f32 %v286_v48, %v284_v47  ;;  %v362_v58 = vrot.slane %v903_v49, 2  ;;  %v346_v0 = vrot.slane %v905_v51, 1  ;;  %vm380_vm10 = vcmask 1043459  }
  0x61   : > { %v352_v1 = vrot.slane %v907_v52, 1  ;;  %v918_v2 = vadd.f32 %v356_v53, %v355_v45  ;;  %vm402_vm11 = vcmask 1043456  }
  0x66   : > { %v599_v18 = vpop.eup %598 }
  0x67   : > { %v601_v19 = vpop.eup %600 }
  0x68   : > { %v603_v21 = vpop.eup %602  ;;  %v269_v22 = vadd.f32 %v601_v19, %v599_v18 }
  0x69   : > { %v605_v23 = vpop.eup %604 }
  0x6a   : > { %v270_v24 = vadd.f32 %v603_v21, %v269_v22 }
  0x6c   : > { %v271_v29 = vadd.f32 %v605_v23, %v270_v24 }
  0x6e   : > { %606 = vrcp.f32 %v271_v29 }
  0x6f   : > { %608 = vlog2.f32 %v271_v29 }
  0x78   : > { %v607_v50 = vpop.eup %606 }
  0x79   : > { %v609_v54 = vpop.eup %608  ;;  %v276_v55 = vmul.f32 %v607_v50, %v901_v46 }
  0x7a   : > { %v273_v56 = vmul.f32 0.6931472, %v609_v54 }
  0x7b   : > { %v277_v59 = vmul.f32 %v599_v18, %v276_v55  ;;  %v278_v60 = vmul.f32 %v601_v19, %v276_v55  ;;  %v279_v61 = vmul.f32 %v603_v21, %v276_v55  ;;  %v280_v62 = vmul.f32 %v605_v23, %v276_v55 }
  0x7c   : > { %v914_v63 = vadd.f32 %v273_v56, %v895_v7 }
  0x7d   : > { %v290_v3 = vmul.f32 %v527_v27, %v277_v59  ;;  %v291_v4 = vmul.f32 %v528_v28, %v278_v60  ;;  %v292_v5 = vmul.f32 %v529_v35, %v279_v61  ;;  %v293_v6 = vmul.f32 %v530_v39, %v280_v62 }
  0x7e   : > { %v318_v8 = vrot.slane %v277_v59, 4  ;;  %v324_v9 = vrot.slane %v278_v60, 4  ;;  %v330_v10 = vrot.slane %v279_v61, 4  ;;  %v336_v11 = vrot.slane %v280_v62, 4 }
  0x7f   : > { %v294_v12 = vrot.slane %v290_v3, 4  ;;  %v300_v13 = vrot.slane %v291_v4, 4  ;;  %v306_v14 = vrot.slane %v292_v5, 4  ;;  %v312_v15 = vrot.slane %v293_v6, 4 }
  0x80   : > { %v319_v7 = vadd.f32 %v318_v8, %v277_v59  ;;  %v325_v16 = vadd.f32 %v324_v9, %v278_v60  ;;  %v331_v17 = vadd.f32 %v330_v10, %v279_v61  ;;  %v337_v18 = vadd.f32 %v336_v11, %v280_v62 }
  0x81   : > { %v295_v19 = vadd.f32 %v294_v12, %v290_v3  ;;  %v301_v20 = vadd.f32 %v300_v13, %v291_v4  ;;  %v307_v21 = vadd.f32 %v306_v14, %v292_v5  ;;  %v313_v22 = vadd.f32 %v312_v15, %v293_v6 }
  0x82   : > { %v320_v23 = vrot.slane %v319_v7, 2  ;;  %v326_v24 = vrot.slane %v325_v16, 2  ;;  %v332_v25 = vrot.slane %v331_v17, 2  ;;  %v338_v26 = vrot.slane %v337_v18, 2 }
  0x83   : > { %v296_v27 = vrot.slane %v295_v19, 2  ;;  %v302_v28 = vrot.slane %v301_v20, 2  ;;  %v308_v29 = vrot.slane %v307_v21, 2  ;;  %v314_v30 = vrot.slane %v313_v22, 2 }
  0x84   : > { %v321_v31 = vadd.f32 %v320_v23, %v319_v7  ;;  %v327_v32 = vadd.f32 %v326_v24, %v325_v16  ;;  %v333_v33 = vadd.f32 %v332_v25, %v331_v17  ;;  %v339_v34 = vadd.f32 %v338_v26, %v337_v18 }
  0x85   : > { %v297_v35 = vadd.f32 %v296_v27, %v295_v19  ;;  %v303_v36 = vadd.f32 %v302_v28, %v301_v20  ;;  %v309_v37 = vadd.f32 %v308_v29, %v307_v21  ;;  %v315_v38 = vadd.f32 %v314_v30, %v313_v22 }
  0x86   : > { %v322_v39 = vrot.slane %v321_v31, 1  ;;  %v328_v40 = vrot.slane %v327_v32, 1  ;;  %v334_v41 = vrot.slane %v333_v33, 1  ;;  %v340_v42 = vrot.slane %v339_v34, 1 }
  0x87   : > { %v298_v43 = vrot.slane %v297_v35, 1  ;;  %v304_v44 = vrot.slane %v303_v36, 1  ;;  %v310_v45 = vrot.slane %v309_v37, 1  ;;  %v316_v47 = vrot.slane %v315_v38, 1 }
  0x88   : > { %v323_v48 = vadd.f32 %v322_v39, %v321_v31  ;;  %v329_v50 = vadd.f32 %v328_v40, %v327_v32  ;;  %v335_v53 = vadd.f32 %v334_v41, %v333_v33  ;;  %v341_v54 = vadd.f32 %v340_v42, %v339_v34 }
  0x89   : > { %v299_v55 = vadd.f32 %v298_v43, %v297_v35  ;;  %v305_v56 = vadd.f32 %v304_v44, %v303_v36  ;;  %v311_v59 = vadd.f32 %v310_v45, %v309_v37  ;;  %v317_v60 = vadd.f32 %v316_v47, %v315_v38 }
  0x8a   : > { %v388_v61 = vsel %vm387_vm5, %v329_v50, %v323_v48  ;;  %v288_v62 = vsub.f32 %v914_v63, %v910_v57  ;;  %v363_v5 = vadd.f32 %v362_v58, %v903_v49  ;;  %v358_v10 = vrot.slane %v918_v2, 1 }
  0x8b   : > { %v377_v3 = vsel %vm376_vm6, %v305_v56, %v299_v55  ;;  %v390_v4 = vsel %vm389_vm7, %v335_v53, %v388_v61  ;;  %v347_v63 = vadd.f32 %v346_v0, %v905_v51  ;;  %v353_v11 = vadd.f32 %v352_v1, %v907_v52  ;;  %v406_v1 = vld [vmem:[%s892_s27 + $0x8] sm:$0x1f] }
  0x8c   : > { %v379_v6 = vsel %vm378_vm8, %v311_v59, %v377_v3  ;;  %v392_v8 = vsel %vm391_vm9, %v341_v54, %v390_v4  ;;  %v289_v9 = vmul.f32 %v901_v46, %v288_v62  ;;  %v364_v12 = vrot.slane %v363_v5, 1 }
  0x8d   : > { %v381_v57 = vsel %vm380_vm10, %v317_v60, %v379_v6  ;;  %v359_v46 = vadd.f32 %v358_v10, %v918_v2  ;;  %v398_v14 = vsel %vm376_vm6, %v353_v11, %v347_v63 }
  0x8e   : > { %v403_v49 = vsel %vm402_vm11, %v381_v57, %v392_v8  ;;  %v366_v58 = vrot.slane %v289_v9, 4  ;;  %v365_v7 = vadd.f32 %v364_v12, %v363_v5 }
  0x8f   : > { %409 = vst [vmem:[%s892_s27] sm:$0xff] %v403_v49  ;;  %v399_v51 = vsel %vm378_vm8, %v359_v46, %v398_v14 }
  0x90   : > { %v367_v13 = vadd.f32 %v366_v58, %v289_v9  ;;  %v400_v17 = vsel %vm380_vm10, %v365_v7, %v399_v51 }
  0x92   : > { %v368_v15 = vrot.slane %v367_v13, 2 }
  0x94   : > { %v369_v16 = vadd.f32 %v368_v15, %v367_v13 }
  0x96   : > { %v370_v0 = vrot.slane %v369_v16, 1 }
  0x98   : > { %v371_v52 = vadd.f32 %v370_v0, %v369_v16 }
  0x9a   : > { %v404_v18 = vsel %vm402_vm11, %v400_v17, %v371_v52 }
  0x9b   : > { %v408_v19 = vadd.f32 %v406_v1, %v404_v18 }
  0x9d   : > { %410 = vst [vmem:[%s892_s27 + $0x8] sm:$0x1f] %v408_v19 }
  0x9e PF: > { %s18_s14 = sadd.s32 1, %s724_s14   ;;  %s976_s9 = smov %s708_s10 }
  0x9f   : > { %p15_p9 = scmp.ge.s32.totalorder %s18_s14, 4   ;;  %s977_s10 = smov %s712_s11 }
  0xa0   : > { %s978_s11 = smov %s795_s21  ;;  %s979_s12 = smov %s720_s13 }
  0xa1   : > { %s980_s13 = smov %s982_s16  ;;  %17 = sbr.rel (!%p15_p9) target bundleno = 6 (0x6), region = 85 }
  0xa8   :  { %432 = vsyncpa [#allocation3], 1 }
  0xa9   :  { %434 = vsyncpa [#allocation3 + $0x1], 1 }
  0xaa   :  { %435 = vsyncpa [#allocation5], 1 }
  0xab   :  { %437 = vsyncpa [#allocation5 + $0x1], 1 }

</bundles_post_ra>
